<compile_context>
chip_gen: v5e
topology: v5e:2x2
jax: 0.10.0
libtpu: 0.0.40
codegen_flags: <defaults>
</compile_context>

<pallas_src>
import jax
import jax.numpy as jnp
from jax.experimental import pallas as pl
from jax.experimental.pallas import tpu as pltpu

LANE = 128      # lane width (last dim)
SUBLANE = 8     # f32 sublane width (second-to-last dim)


def _round_up(x, m):
    return ((x + m - 1) // m) * m


def _pad2d(a, rows, cols):
    r, c = a.shape
    if r == rows and c == cols:
        return a
    return jnp.pad(a, ((0, rows - r), (0, cols - c)))


def task_ae_kernel(x_ref,
                   w1_ref, b1_ref, w2_ref, b2_ref,   # encoder
                   w3_ref, b3_ref, w4_ref, b4_ref,   # decoder
                   emb_ref, recon_ref):
    x = x_ref[...]

    # encoder: Linear(task -> hidden_p) + ReLU + Linear(hidden_p -> latent)
    h = jnp.dot(x, w1_ref[...], preferred_element_type=jnp.float32) + b1_ref[...]
    h = jnp.maximum(h, 0.0)
    emb = jnp.dot(h, w2_ref[...], preferred_element_type=jnp.float32) + b2_ref[...]
    emb_ref[...] = emb.astype(emb_ref.dtype)

    # decoder: Linear(latent -> hidden_p) + ReLU + Linear(hidden_p -> task)
    # (consumes the in-register f32 emb, matching the f32 reference)
    h2 = jnp.dot(emb, w3_ref[...], preferred_element_type=jnp.float32) + b3_ref[...]
    h2 = jnp.maximum(h2, 0.0)
    recon = jnp.dot(h2, w4_ref[...], preferred_element_type=jnp.float32) + b4_ref[...]
    recon_ref[...] = recon.astype(recon_ref.dtype)


def prepare_params(params):
    """One-time (hoisted) padding of the *hidden* feature dim to a lane multiple.

    Zero padding is a mathematical no-op: padded h columns are exactly 0
    (zero weight cols + zero bias), ReLU(0)=0, and the matching padded rows of
    the next weight are also 0.  task_dim / latent_dim stay unpadded.
    """
    task_dim, hidden_dim = params["w1"].shape
    latent_dim = params["w2"].shape[1]
    hidden_p = _round_up(hidden_dim, LANE)
    return dict(
        w1=_pad2d(params["w1"], task_dim, hidden_p),
        b1=_pad2d(params["b1"], 1, hidden_p),
        w2=_pad2d(params["w2"], hidden_p, latent_dim),
        b2=params["b2"],
        w3=_pad2d(params["w3"], latent_dim, hidden_p),
        b3=_pad2d(params["b3"], 1, hidden_p),
        w4=_pad2d(params["w4"], hidden_p, task_dim),
        b4=params["b4"],
    )


def _pick_block_b(B):
    """Multiple-of-8 batch tile <= B, capped at 2048 rows.

    For large B the tile is shrunk so the grid has >= 4 steps (>= 2 per
    TensorCore after a v7x megacore split, restoring per-core double
    buffering), but never below 128 rows.
    """
    if B <= SUBLANE:
        return B                              # full-array block (exempt)
    bb = min((B // SUBLANE) * SUBLANE, 2048)  # amortize ~0.35us/step overhead
    target = _round_up(pl.cdiv(B, 4), SUBLANE)
    return max(min(bb, target), min(bb, 128))


def task_ae_forward(x, padded_params, *, block_b=None):
    """x: (B, task_dim) float32. padded_params: output of prepare_params()."""
    p = padded_params
    B, task_dim = x.shape
    task_dim_w, hidden_p = p["w1"].shape
    latent_dim = p["w2"].shape[1]
    assert task_dim == task_dim_w, "x feature dim must match w1's input dim"

    if block_b is None:
        block_b = _pick_block_b(B)
    grid = (pl.cdiv(B, block_b),)

    def stream_spec(cols):
        # streamed activation tile: new batch rows every grid step;
        # last dim equals the full array dim -> exempt from the 128 rule.
        return pl.BlockSpec((block_b, cols), lambda i: (i, 0))

    def resident_spec(r, c):
        # constant index map => DMA'd once, stays resident in VMEM across steps
        return pl.BlockSpec((r, c), lambda i: (0, 0))

    flops = 2 * B * (task_dim * hidden_p + hidden_p * latent_dim
                     + latent_dim * hidden_p + hidden_p * task_dim)
    bytes_accessed = 4 * (x.size + B * latent_dim + B * task_dim
                          + sum(int(v.size) for v in p.values()))

    emb, recon = pl.pallas_call(
        task_ae_kernel,
        out_shape=(
            jax.ShapeDtypeStruct((B, latent_dim), x.dtype),
            jax.ShapeDtypeStruct((B, task_dim), x.dtype),
        ),
        grid_spec=pl.GridSpec(
            grid=grid,
            in_specs=[
                stream_spec(task_dim),                  # x
                resident_spec(task_dim, hidden_p),      # w1
                resident_spec(1, hidden_p),             # b1
                resident_spec(hidden_p, latent_dim),    # w2
                resident_spec(1, latent_dim),           # b2
                resident_spec(latent_dim, hidden_p),    # w3
                resident_spec(1, hidden_p),             # b3
                resident_spec(hidden_p, task_dim),      # w4
                resident_spec(1, task_dim),             # b4
            ],
            out_specs=(
                stream_spec(latent_dim),                # emb  (unpadded)
                stream_spec(task_dim),                  # recon (unpadded)
            ),
        ),
        compiler_params=pltpu.CompilerParams(
            dimension_semantics=("parallel",)),
        cost_estimate=pl.CostEstimate(
            flops=flops, transcendentals=0, bytes_accessed=bytes_accessed),
    )(x, p["w1"], p["b1"], p["w2"], p["b2"], p["w3"], p["b3"], p["w4"], p["b4"])

    return emb, recon


def init_params(key, task_dim, latent_dim, hidden_dim=64):
    """Deterministic init; weights stored (in, out)."""
    ks = jax.random.split(key, 8)

    def lin(kw, kb, fan_in, fan_out):
        # uniform(-1/sqrt(fan_in), 1/sqrt(fan_in)) like PyTorch nn.Linear
        bound = 1.0 / jnp.sqrt(fan_in)
        w = jax.random.uniform(kw, (fan_in, fan_out), jnp.float32, -bound, bound)
        b = jax.random.uniform(kb, (1, fan_out), jnp.float32, -bound, bound)
        return w, b

    w1, b1 = lin(ks[0], ks[1], task_dim, hidden_dim)
    w2, b2 = lin(ks[2], ks[3], hidden_dim, latent_dim)
    w3, b3 = lin(ks[4], ks[5], latent_dim, hidden_dim)
    w4, b4 = lin(ks[6], ks[7], hidden_dim, task_dim)
    return dict(w1=w1, b1=b1, w2=w2, b2=b2, w3=w3, b3=b3, w4=w4, b4=b4)


def task_ae_reference(x, p):
    h = jnp.maximum(x @ p["w1"] + p["b1"], 0.0)
    emb = h @ p["w2"] + p["b2"]
    h2 = jnp.maximum(emb @ p["w3"] + p["b3"], 0.0)
    recon = h2 @ p["w4"] + p["b4"]
    return emb, recon


if __name__ == "__main__":
    task_dim, latent_dim, hidden_dim = 32, 16, 64

    key = jax.random.PRNGKey(0)
    kx, kp, kx2 = jax.random.split(key, 3)
    params = init_params(kp, task_dim, latent_dim, hidden_dim)
    padded_params = prepare_params(params)          # hoisted, done once

    # small test (B <= 8, single full-array block)
    batch = 8
    x = jax.random.normal(kx, (batch, task_dim), dtype=jnp.float32)
    emb, recon = task_ae_forward(x, padded_params)
    jax.block_until_ready((emb, recon))
    emb_ref, recon_ref = task_ae_reference(x, params)
    assert emb.shape == (batch, latent_dim)
    assert recon.shape == (batch, task_dim)
    assert jnp.allclose(emb, emb_ref, atol=1e-5, rtol=1e-5)
    assert jnp.allclose(recon, recon_ref, atol=1e-5, rtol=1e-5)

    # larger, non-divisible batch exercising a multi-step grid with a partial
    # last block (masked output stores for the out-of-range rows)
    batch2 = 20
    x2 = jax.random.normal(kx2, (batch2, task_dim), dtype=jnp.float32)
    emb2, recon2 = task_ae_forward(x2, padded_params)
    jax.block_until_ready((emb2, recon2))
    emb2_ref, recon2_ref = task_ae_reference(x2, params)
    assert emb2.shape == (batch2, latent_dim)
    assert recon2.shape == (batch2, task_dim)
    assert jnp.allclose(emb2, emb2_ref, atol=1e-5, rtol=1e-5)
    assert jnp.allclose(recon2, recon2_ref, atol=1e-5, rtol=1e-5)

    print("KERNEL_OK")
</pallas_src>

<mosaic_0001>
module attributes {stable_mosaic.version = 11 : i64} {
  func.func @task_ae_kernel(%arg0: i32, %arg1: memref<8x32xf32, #tpu.memory_space<vmem>>, %arg2: memref<32x128xf32, #tpu.memory_space<vmem>>, %arg3: memref<1x128xf32, #tpu.memory_space<vmem>>, %arg4: memref<128x16xf32, #tpu.memory_space<vmem>>, %arg5: memref<1x16xf32, #tpu.memory_space<vmem>>, %arg6: memref<16x128xf32, #tpu.memory_space<vmem>>, %arg7: memref<1x128xf32, #tpu.memory_space<vmem>>, %arg8: memref<128x32xf32, #tpu.memory_space<vmem>>, %arg9: memref<1x32xf32, #tpu.memory_space<vmem>>, %arg10: memref<8x16xf32, #tpu.memory_space<vmem>>, %arg11: memref<8x32xf32, #tpu.memory_space<vmem>>) attributes {dimension_semantics = [#tpu.dimension_semantics<parallel>], iteration_bounds = array<i64: 1>, scalar_prefetch = 0 : i64, scratch_operands = 0 : i64, tpu.core_type = #tpu.core_type<tc>, window_params = [{transform_indices = @transform_0, window_bounds = array<i64: 8, 32>}, {pipeline_mode = #tpu.pipeline_mode<synchronous>, transform_indices = @transform_1, window_bounds = array<i64: 32, 128>}, {pipeline_mode = #tpu.pipeline_mode<synchronous>, transform_indices = @transform_2, window_bounds = array<i64: 1, 128>}, {pipeline_mode = #tpu.pipeline_mode<synchronous>, transform_indices = @transform_3, window_bounds = array<i64: 128, 16>}, {pipeline_mode = #tpu.pipeline_mode<synchronous>, transform_indices = @transform_4, window_bounds = array<i64: 1, 16>}, {pipeline_mode = #tpu.pipeline_mode<synchronous>, transform_indices = @transform_5, window_bounds = array<i64: 16, 128>}, {pipeline_mode = #tpu.pipeline_mode<synchronous>, transform_indices = @transform_6, window_bounds = array<i64: 1, 128>}, {pipeline_mode = #tpu.pipeline_mode<synchronous>, transform_indices = @transform_7, window_bounds = array<i64: 128, 32>}, {pipeline_mode = #tpu.pipeline_mode<synchronous>, transform_indices = @transform_8, window_bounds = array<i64: 1, 32>}, {transform_indices = @transform_9, window_bounds = array<i64: 8, 16>}, {transform_indices = @transform_10, window_bounds = array<i64: 8, 32>}]} {
    %c0 = arith.constant 0 : index
    %c0_0 = arith.constant 0 : index
    %0 = vector.load %arg1[%c0, %c0_0] : memref<8x32xf32, #tpu.memory_space<vmem>>, vector<8x32xf32>
    %c0_1 = arith.constant 0 : index
    %c0_2 = arith.constant 0 : index
    %1 = vector.load %arg2[%c0_1, %c0_2] : memref<32x128xf32, #tpu.memory_space<vmem>>, vector<32x128xf32>
    %cst = arith.constant dense<0.000000e+00> : vector<8x128xf32>
    %2 = tpu.matmul %0, %1, %cst {dimension_numbers = #tpu.dot_dimension_numbers<[1], [0], [0], [1], [0, 0, 1, 1], [], []>} : vector<8x32xf32>, vector<32x128xf32>, vector<8x128xf32> -> vector<8x128xf32>
    %c0_3 = arith.constant 0 : index
    %c0_4 = arith.constant 0 : index
    %3 = vector.load %arg3[%c0_3, %c0_4] : memref<1x128xf32, #tpu.memory_space<vmem>>, vector<1x128xf32>
    %4 = vector.broadcast %3 : vector<1x128xf32> to vector<8x128xf32>
    %5 = arith.addf %2, %4 : vector<8x128xf32>
    %cst_5 = arith.constant 0.000000e+00 : f32
    %6 = vector.broadcast %cst_5 : f32 to vector<8x128xf32>
    %7 = arith.maximumf %5, %6 : vector<8x128xf32>
    %c0_6 = arith.constant 0 : index
    %c0_7 = arith.constant 0 : index
    %8 = vector.load %arg4[%c0_6, %c0_7] : memref<128x16xf32, #tpu.memory_space<vmem>>, vector<128x16xf32>
    %cst_8 = arith.constant dense<0.000000e+00> : vector<8x16xf32>
    %9 = tpu.matmul %7, %8, %cst_8 {dimension_numbers = #tpu.dot_dimension_numbers<[1], [0], [0], [1], [0, 0, 1, 1], [], []>} : vector<8x128xf32>, vector<128x16xf32>, vector<8x16xf32> -> vector<8x16xf32>
    %c0_9 = arith.constant 0 : index
    %c0_10 = arith.constant 0 : index
    %10 = vector.load %arg5[%c0_9, %c0_10] : memref<1x16xf32, #tpu.memory_space<vmem>>, vector<1x16xf32>
    %11 = vector.broadcast %10 : vector<1x16xf32> to vector<8x16xf32>
    %12 = arith.addf %9, %11 : vector<8x16xf32>
    %c0_11 = arith.constant 0 : index
    %c0_12 = arith.constant 0 : index
    %13 = vector.load %arg10[%c0_11, %c0_12] : memref<8x16xf32, #tpu.memory_space<vmem>>, vector<8x16xf32>
    tpu.vector_store %arg10[%c0_11, %c0_12], %12 {strides = array<i32>} : memref<8x16xf32, #tpu.memory_space<vmem>>, vector<8x16xf32>,
    %c0_13 = arith.constant 0 : index
    %c0_14 = arith.constant 0 : index
    %14 = vector.load %arg6[%c0_13, %c0_14] : memref<16x128xf32, #tpu.memory_space<vmem>>, vector<16x128xf32>
    %cst_15 = arith.constant dense<0.000000e+00> : vector<8x128xf32>
    %15 = tpu.matmul %12, %14, %cst_15 {dimension_numbers = #tpu.dot_dimension_numbers<[1], [0], [0], [1], [0, 0, 1, 1], [], []>} : vector<8x16xf32>, vector<16x128xf32>, vector<8x128xf32> -> vector<8x128xf32>
    %c0_16 = arith.constant 0 : index
    %c0_17 = arith.constant 0 : index
    %16 = vector.load %arg7[%c0_16, %c0_17] : memref<1x128xf32, #tpu.memory_space<vmem>>, vector<1x128xf32>
    %17 = vector.broadcast %16 : vector<1x128xf32> to vector<8x128xf32>
    %18 = arith.addf %15, %17 : vector<8x128xf32>
    %cst_18 = arith.constant 0.000000e+00 : f32
    %19 = vector.broadcast %cst_18 : f32 to vector<8x128xf32>
    %20 = arith.maximumf %18, %19 : vector<8x128xf32>
    %c0_19 = arith.constant 0 : index
    %c0_20 = arith.constant 0 : index
    %21 = vector.load %arg8[%c0_19, %c0_20] : memref<128x32xf32, #tpu.memory_space<vmem>>, vector<128x32xf32>
    %cst_21 = arith.constant dense<0.000000e+00> : vector<8x32xf32>
    %22 = tpu.matmul %20, %21, %cst_21 {dimension_numbers = #tpu.dot_dimension_numbers<[1], [0], [0], [1], [0, 0, 1, 1], [], []>} : vector<8x128xf32>, vector<128x32xf32>, vector<8x32xf32> -> vector<8x32xf32>
    %c0_22 = arith.constant 0 : index
    %c0_23 = arith.constant 0 : index
    %23 = vector.load %arg9[%c0_22, %c0_23] : memref<1x32xf32, #tpu.memory_space<vmem>>, vector<1x32xf32>
    %24 = vector.broadcast %23 : vector<1x32xf32> to vector<8x32xf32>
    %25 = arith.addf %22, %24 : vector<8x32xf32>
    %c0_24 = arith.constant 0 : index
    %c0_25 = arith.constant 0 : index
    %26 = vector.load %arg11[%c0_24, %c0_25] : memref<8x32xf32, #tpu.memory_space<vmem>>, vector<8x32xf32>
    tpu.vector_store %arg11[%c0_24, %c0_25], %25 {strides = array<i32>} : memref<8x32xf32, #tpu.memory_space<vmem>>, vector<8x32xf32>,
    return
  }
  func.func @transform_0(%arg0: i32) -> (i32, i32) {
    %c0_i32 = arith.constant 0 : i32
    %c0_i32_0 = arith.constant 0 : i32
    return %arg0, %c0_i32 : i32, i32
  }
  func.func @transform_1(%arg0: i32) -> (i32, i32) {
    %c0_i32 = arith.constant 0 : i32
    %c0_i32_0 = arith.constant 0 : i32
    %c0_i32_1 = arith.constant 0 : i32
    return %c0_i32, %c0_i32_0 : i32, i32
  }
  func.func @transform_2(%arg0: i32) -> (i32, i32) {
    %c0_i32 = arith.constant 0 : i32
    %c0_i32_0 = arith.constant 0 : i32
    %c0_i32_1 = arith.constant 0 : i32
    return %c0_i32, %c0_i32_0 : i32, i32
  }
  func.func @transform_3(%arg0: i32) -> (i32, i32) {
    %c0_i32 = arith.constant 0 : i32
    %c0_i32_0 = arith.constant 0 : i32
    %c0_i32_1 = arith.constant 0 : i32
    return %c0_i32, %c0_i32_0 : i32, i32
  }
  func.func @transform_4(%arg0: i32) -> (i32, i32) {
    %c0_i32 = arith.constant 0 : i32
    %c0_i32_0 = arith.constant 0 : i32
    %c0_i32_1 = arith.constant 0 : i32
    return %c0_i32, %c0_i32_0 : i32, i32
  }
  func.func @transform_5(%arg0: i32) -> (i32, i32) {
    %c0_i32 = arith.constant 0 : i32
    %c0_i32_0 = arith.constant 0 : i32
    %c0_i32_1 = arith.constant 0 : i32
    return %c0_i32, %c0_i32_0 : i32, i32
  }
  func.func @transform_6(%arg0: i32) -> (i32, i32) {
    %c0_i32 = arith.constant 0 : i32
    %c0_i32_0 = arith.constant 0 : i32
    %c0_i32_1 = arith.constant 0 : i32
    return %c0_i32, %c0_i32_0 : i32, i32
  }
  func.func @transform_7(%arg0: i32) -> (i32, i32) {
    %c0_i32 = arith.constant 0 : i32
    %c0_i32_0 = arith.constant 0 : i32
    %c0_i32_1 = arith.constant 0 : i32
    return %c0_i32, %c0_i32_0 : i32, i32
  }
  func.func @transform_8(%arg0: i32) -> (i32, i32) {
    %c0_i32 = arith.constant 0 : i32
    %c0_i32_0 = arith.constant 0 : i32
    %c0_i32_1 = arith.constant 0 : i32
    return %c0_i32, %c0_i32_0 : i32, i32
  }
  func.func @transform_9(%arg0: i32) -> (i32, i32) {
    %c0_i32 = arith.constant 0 : i32
    %c0_i32_0 = arith.constant 0 : i32
    return %arg0, %c0_i32 : i32, i32
  }
  func.func @transform_10(%arg0: i32) -> (i32, i32) {
    %c0_i32 = arith.constant 0 : i32
    %c0_i32_0 = arith.constant 0 : i32
    return %arg0, %c0_i32 : i32, i32
  }
}

</mosaic_0001>

<bundles_post_ra>
// kernel: tpu_custom_call.1
= control target key start
LH: loop header
LB: loop body
LE: loop exit
PB: predicated region body
PF: predicated region fallthrough
CT: control target
= control target key end

     0   :  { %16 = vsyncpa [#allocation3], 0  ;;  %vm45_vm0 = vcmask 261120   ;;  %s469_s0 = inlined_call_operand.vmem [shape: f32[8,32], index: 0, kind: input, shape index: {}]   ;;  %s470_s1 = inlined_call_operand.vmem [shape: f32[32,128], index: 1, kind: input, shape index: {}]   ;;  %s471_s2 = inlined_call_operand.vmem [shape: f32[1,128], index: 2, kind: input, shape index: {}]   ;;  %s472_s3 = inlined_call_operand.vmem [shape: f32[128,16], index: 3, kind: input, shape index: {}]   ;;  %s473_s4 = inlined_call_operand.vmem [shape: f32[1,16], index: 4, kind: input, shape index: {}]   ;;  %s474_s5 = inlined_call_operand.vmem [shape: f32[16,128], index: 5, kind: input, shape index: {}]   ;;  %s475_s6 = inlined_call_operand.vmem [shape: f32[1,128], index: 6, kind: input, shape index: {}]   ;;  %s476_s7 = inlined_call_operand.vmem [shape: f32[128,32], index: 7, kind: input, shape index: {}]   ;;  %s477_s8 = inlined_call_operand.vmem [shape: f32[1,32], index: 8, kind: input, shape index: {}]   ;;  %s478_s9 = inlined_call_operand.hbm [shape: f32[8,16], index: 9, kind: output, shape index: {0}]   ;;  %s479_s10 = inlined_call_operand.hbm [shape: f32[8,32], index: 10, kind: output, shape index: {1}]  }
   0x1   :  { %v40_v0 = vld [vmem:[%s470_s1 + $0x18] sm:$0xff]  ;;  %v39_v1 = vld [vmem:[%s470_s1 + $0x10] sm:$0xff]  ;;  %v38_v3 = vld [vmem:[%s470_s1 + $0x8] sm:$0xff] }
   0x2   :  { %61 = vmatpush.msra.mxu0 %v40_v0  ;;  %v85_v2 = vld [vmem:[%s472_s3 + $0x78] sm:$0xff]  ;;  %v84_v4 = vld [vmem:[%s472_s3 + $0x70] sm:$0xff]  ;;  %v83_v5 = vld [vmem:[%s472_s3 + $0x68] sm:$0xff] }
   0x3   :  { %90 = vmatpush.msra.mxu1 %v85_v2  ;;  %v37_v6 = vld [vmem:[%s470_s1] sm:$0xff]  ;;  %v81_v9 = vld [vmem:[%s472_s3 + $0x58] sm:$0xff] }
   0x4   :  { %62 = vmatpush.msra.mxu0 %v39_v1  ;;  %v36_v7 = vld [vmem:[%s469_s0] sm:$0xff] }
   0x5   :  { %91 = vmatpush.msra.mxu1 %v84_v4  ;;  %v82_v8 = vld [vmem:[%s472_s3 + $0x60] sm:$0xff] }
   0x6   :  { %63 = vmatpush.msra.mxu0 %v38_v3 }
   0x7   :  { %92 = vmatpush.msra.mxu1 %v83_v5 }
   0x8   :  { %64 = vmatpush.msra.mxu0 %v37_v6 }
   0x9   :  { %17 = vsyncpa [#allocation5], 0  ;;  %215 = vmatmul.msk.f32.vlgmr.msra.gmra.mxu0 %vm45_vm0, %v36_v7  ;;  %93 = vmatpush.msra.mxu1 %v82_v8  ;;  %v80_v10 = vld [vmem:[%s472_s3 + $0x50] sm:$0xff]  ;;  %v79_v11 = vld [vmem:[%s472_s3 + $0x48] sm:$0xff]  ;;  %vm110_vm1 = vcmask 130048   ;;  %s275_s24 = smov [#allocation2]  }
   0xa   :  { %v78_v12 = vld [vmem:[%s472_s3 + $0x40] sm:$0xff]  ;;  %v77_v13 = vld [vmem:[%s472_s3 + $0x38] sm:$0xff]  ;;  %v76_v14 = vld [vmem:[%s472_s3 + $0x30] sm:$0xff]  ;;  %s188_s25 = sshll.u32 %s275_s24, 4  ;;  %s190_s28 = sshll.u32 %s478_s9, 4  ;;  %s189_s25 = int_to_ptr.vmem [resolvable:$true] %s188_s25  ;;  %s191_s28 = int_to_ptr.hbm [resolvable:$true] %s190_s28 }
   0xb   :  { %94 = vmatpush.msra.mxu1 %v81_v9  ;;  %v75_v15 = vld [vmem:[%s472_s3 + $0x28] sm:$0xff]  ;;  %v74_v16 = vld [vmem:[%s472_s3 + $0x20] sm:$0xff]  ;;  %v73_v17 = vld [vmem:[%s472_s3 + $0x18] sm:$0xff]  ;;  %s276_s30 = smov [#allocation4]   ;;  %s201_s1 = sshll.u32 %s479_s10, 4  ;;  %s202_s1 = int_to_ptr.hbm [resolvable:$true] %s201_s1 }
   0xc   :  { %v72_v18 = vld [vmem:[%s472_s3 + $0x10] sm:$0xff]  ;;  %v71_v19 = vld [vmem:[%s472_s3 + $0x8] sm:$0xff]  ;;  %v70_v20 = vld [vmem:[%s472_s3] sm:$0xff]  ;;  %s199_s11 = sshll.u32 %s276_s30, 4  ;;  %s200_s11 = int_to_ptr.vmem [resolvable:$true] %s199_s11 }
   0xd   :  { %95 = vmatpush.msra.mxu1 %v80_v10  ;;  %v219_v21 = vld [vmem:[%s471_s2] ss:$0 sm:$0xff]  ;;  %v113_v25 = vld [vmem:[%s474_s5 + $0x8] sm:$0xff]  ;;  %v157_v27 = vld [vmem:[%s476_s7 + $0x78] sm:$0xff] }
   0xe   :  { %135 = vmatpush.msra.mxu2 %v113_v25  ;;  %v112_v26 = vld [vmem:[%s474_s5] sm:$0xff]  ;;  %v156_v28 = vld [vmem:[%s476_s7 + $0x70] sm:$0xff]  ;;  %162 = vmatpush.msra.mxu3 %v157_v27  ;;  %v155_v29 = vld [vmem:[%s476_s7 + $0x68] sm:$0xff] }
   0xf   :  { %96 = vmatpush.msra.mxu1 %v79_v11  ;;  %v154_v30 = vld [vmem:[%s476_s7 + $0x60] sm:$0xff]  ;;  %v153_v31 = vld [vmem:[%s476_s7 + $0x58] sm:$0xff]  ;;  %v152_v32 = vld [vmem:[%s476_s7 + $0x50] sm:$0xff] }
  0x10   :  { %136 = vmatpush.msra.mxu2 %v112_v26  ;;  %163 = vmatpush.msra.mxu3 %v156_v28  ;;  %v151_v33 = vld [vmem:[%s476_s7 + $0x48] sm:$0xff]  ;;  %v150_v34 = vld [vmem:[%s476_s7 + $0x40] sm:$0xff]  ;;  %v149_v35 = vld [vmem:[%s476_s7 + $0x38] sm:$0xff] }
  0x11   :  { %97 = vmatpush.msra.mxu1 %v78_v12  ;;  %v148_v36 = vld [vmem:[%s476_s7 + $0x30] sm:$0xff]  ;;  %v147_v37 = vld [vmem:[%s476_s7 + $0x28] sm:$0xff]  ;;  %v146_v38 = vld [vmem:[%s476_s7 + $0x20] sm:$0xff] }
  0x12   :  { %164 = vmatpush.msra.mxu3 %v155_v29  ;;  %v145_v39 = vld [vmem:[%s476_s7 + $0x18] sm:$0xff]  ;;  %v220_v40 = vld [vmem:[%s473_s4] ss:$0 sm:$0xff]  ;;  %v144_v43 = vld [vmem:[%s476_s7 + $0x10] sm:$0xff] }
  0x13   :  { %98 = vmatpush.msra.mxu1 %v77_v13  ;;  %v143_v44 = vld [vmem:[%s476_s7 + $0x8] sm:$0xff]  ;;  %v142_v45 = vld [vmem:[%s476_s7] sm:$0xff] }
  0x14   :  { %165 = vmatpush.msra.mxu3 %v154_v30  ;;  %v221_v46 = vld [vmem:[%s475_s6] ss:$0 sm:$0xff] }
  0x15   :  { %99 = vmatpush.msra.mxu1 %v76_v14  ;;  %v222_v50 = vld [vmem:[%s477_s8] ss:$0 sm:$0xff] }
  0x16   :  { %166 = vmatpush.msra.mxu3 %v153_v31 }
  0x17   :  { %100 = vmatpush.msra.mxu1 %v75_v15 }
  0x18   :  { %167 = vmatpush.msra.mxu3 %v152_v32 }
  0x19   :  { %101 = vmatpush.msra.mxu1 %v74_v16 }
  0x1a   :  { %168 = vmatpush.msra.mxu3 %v151_v33 }
  0x1b   :  { %102 = vmatpush.msra.mxu1 %v73_v17 }
  0x1c   :  { %169 = vmatpush.msra.mxu3 %v150_v34 }
  0x1d   :  { %103 = vmatpush.msra.mxu1 %v72_v18 }
  0x1e   :  { %170 = vmatpush.msra.mxu3 %v149_v35 }
  0x1f   :  { %104 = vmatpush.msra.mxu1 %v71_v19 }
  0x20   :  { %171 = vmatpush.msra.mxu3 %v148_v36 }
  0x21   :  { %105 = vmatpush.msra.mxu1 %v70_v20 }
  0x22   :  { %172 = vmatpush.msra.mxu3 %v147_v37 }
  0x24   :  { %173 = vmatpush.msra.mxu3 %v146_v38 }
  0x26   :  { %174 = vmatpush.msra.mxu3 %v145_v39 }
  0x28   :  { %175 = vmatpush.msra.mxu3 %v144_v43 }
  0x2a   :  { %176 = vmatpush.msra.mxu3 %v143_v44 }
  0x2c   :  { %177 = vmatpush.msra.mxu3 %v142_v45 }
  0x86   :  { %v66_v22 = vpop.f32.mrf.mxu0 }
  0x87   :  { %v67_v23 = vadd.f32 %v219_v21, %v66_v22 }
  0x89   :  { %v69_v24 = vmax.f32 %v67_v23, 0.0 }
  0x8b   :  { %106 = vmatmul.f32.vlgmr.msra.gmra.mxu1 %v69_v24 }
 0x108   :  { %v107_v41 = vpop.f32.mrf.mxu1 }
 0x109   :  { %v108_v42 = vadd.f32 %v220_v40, %v107_v41 }
 0x10b   :  { %216 = vmatmul.msk.f32.vlgmr.msra.gmra.mxu2 %vm110_vm1, %v108_v42  ;;  %111 = vst.msk [vmem:[#allocation2] sm:$0xff] %vm110_vm1, %v108_v42 }
 0x10c   :  { %193 = dma.vmem_to_hbm [thread:$0]  %s189_s25, 128, %s191_s28, [#allocation3]  }
 0x18e   :  { %v138_v47 = vpop.f32.mrf.mxu2 }
 0x18f   :  { %v139_v48 = vadd.f32 %v221_v46, %v138_v47 }
 0x191   :  { %v141_v49 = vmax.f32 %v139_v48, 0.0 }
 0x193   :  { %178 = vmatmul.f32.vlgmr.msra.gmra.mxu3 %v141_v49 }
 0x216   :  { %v179_v51 = vpop.f32.mrf.mxu3 }
 0x217   :  { %v180_v52 = vadd.f32 %v222_v50, %v179_v51 }
 0x219   :  { %182 = vst.msk [vmem:[#allocation4] sm:$0xff] %vm45_vm0, %v180_v52 }
 0x21a   :  { %204 = dma.vmem_to_hbm [thread:$0]  %s200_s11, 128, %s202_s1, [#allocation5]  }
 0x21b   :  { %271 = dma.done.wait [#allocation3], 128  }
 0x21c   :  { %272 = vsyncadd [#allocation3], 4294967168 }
 0x21d   :  { %273 = dma.done.wait [#allocation5], 128  }
 0x21e   :  { %274 = vsyncadd [#allocation5], 4294967168 }
 0x21f   :  { %213 = vsyncpa [#allocation3], 1 }
 0x220   :  { %214 = vsyncpa [#allocation5], 1 }

</bundles_post_ra>
